<compile_context>
chip_gen: v7x
topology: tpu7x:2x2x1
jax: 0.10.0
libtpu: 0.0.40
codegen_flags: <defaults>
</compile_context>

<pallas_src>
import jax
import jax.numpy as jnp
from jax import lax
from jax.experimental import pallas as pl
from jax.experimental.pallas import tpu as pltpu


def _round_up(n, m):
    return ((n + m - 1) // m) * m


def _leaf_classifier_kernel(x_ref, w1t_ref, b1_ref, w2_ref, b2_ref, o_ref):
    w1t = w1t_ref[...]                              # (H, F) resident weights
    # In-kernel cast of x to the MXU operand dtype (VPU op hidden under DMA).
    x = x_ref[...].astype(w1t.dtype)                # (TILE_B, F)
    # Layer 1, transposed orientation: h^T = W1^T @ x^T via a q@k.T-style
    # contraction over F (last axis of both operands) -> (H, TILE_B).
    # Batch lands on lanes, so the whole epilogue is lane-dense.
    ht = lax.dot_general(
        w1t, x,
        dimension_numbers=(((1,), (1,)), ((), ())),
        preferred_element_type=jnp.float32)         # (H, TILE_B) f32
    # Bias + ReLU (VPU, lane-dense f32).
    ht = jnp.maximum(ht + b1_ref[...], 0.0)         # b1 is (H, 1)
    # Layer 2 (output width 1): weighted reduction over H (sublane axis).
    out = jnp.sum(ht * w2_ref[...], axis=0) + b2_ref[0, 0]   # (TILE_B,)
    # Lane-dense store: block is (1, 1, TILE_B), no relayout needed.
    o_ref[...] = out.reshape(o_ref.shape).astype(o_ref.dtype)


def _leaf_classifier_xla(x, w1, b1, w2, b2):
    h = jnp.maximum(x @ w1 + b1[None, :], 0.0)
    return h @ w2.reshape(-1, 1) + b2


def leaf_classifier(x, w1, b1, w2, b2, *, tile_b=None, use_bf16=True,
                    small_batch_threshold=512):
    """Forward pass of LeafClassifier: relu(x @ w1 + b1) @ w2 + b2.

    x:  (B, F) float32
    w1: (F, H) float32   (pre-transposed nn.Linear weight)
    b1: (H,)   float32
    w2: (H,)   float32   (nn.Linear(H, 1) weight, flattened)
    b2: ()     float32
    returns (B, 1) float32
    """
    B, F = x.shape
    H = w1.shape[1]

    x = jnp.asarray(x, jnp.float32)
    w1 = jnp.asarray(w1, jnp.float32)
    b1 = jnp.asarray(b1, jnp.float32).reshape(H)
    w2 = jnp.asarray(w2, jnp.float32).reshape(H)
    b2 = jnp.asarray(b2, jnp.float32).reshape(())

    # Small-batch fast path: Pallas launch + pipeline setup is not worth it
    # for a handful of rows of sub-microsecond math on any TPU generation.
    if B < small_batch_threshold:
        return _leaf_classifier_xla(x, w1, b1, w2, b2)

    TILE_CAP = 8192  # rows per tile; amortizes the ~0.35us per-grid-step cost
    if tile_b is None:
        if B <= 128:
            tile_b = _round_up(B, 8)
        else:
            # Even number (>=2) of tiles so v7x megacore can shard the grid.
            n_tiles_target = max(2, _round_up(pl.cdiv(B, TILE_CAP), 2))
            tile_b = min(TILE_CAP, _round_up(pl.cdiv(B, n_tiles_target), 128))
            # VMEM guard (v7x scoped default is smaller than v5e/v6e): keep the
            # double-buffered f32 x tile stream around <= 8 MiB even if F grows.
            vmem_cap_rows = max(128, ((4 << 20) // (F * 4)) // 128 * 128)
            tile_b = min(tile_b, vmem_cap_rows)
    num_tiles = pl.cdiv(B, tile_b)

    # Tiny parameter arrays, prepared once outside the kernel.
    w1t = w1.T                                   # (H, F)
    if use_bf16:
        w1t = w1t.astype(jnp.bfloat16)           # bf16 MXU operands, f32 acc
    b1_col = b1.reshape(H, 1)
    w2_col = w2.reshape(H, 1)
    b2_s = b2.reshape(1, 1)

    out = pl.pallas_call(
        _leaf_classifier_kernel,
        out_shape=jax.ShapeDtypeStruct((num_tiles, 1, tile_b), jnp.float32),
        grid_spec=pltpu.PrefetchScalarGridSpec(
            num_scalar_prefetch=0,
            grid=(num_tiles,),
            in_specs=[
                # x tiled over batch, software-pipelined (ragged last tile's
                # out-of-range rows only feed discarded output rows).
                pl.BlockSpec((tile_b, F), lambda i: (i, 0)),
                # Weights / biases: constant index_map -> VMEM-resident.
                pl.BlockSpec((H, F), lambda i: (0, 0)),
                pl.BlockSpec((H, 1), lambda i: (0, 0)),
                pl.BlockSpec((H, 1), lambda i: (0, 0)),
                # b2 scalar lives in SMEM.
                pl.BlockSpec(memory_space=pltpu.MemorySpace.SMEM),
            ],
            out_specs=pl.BlockSpec((1, 1, tile_b), lambda i: (i, 0, 0)),
        ),
        compiler_params=pltpu.CompilerParams(
            # Independent batch tiles -> megacore-shardable on v7x.
            dimension_semantics=("parallel",)),
    )(x, w1t, b1_col, w2_col, b2_s)

    # Padded / garbage rows of the last tile are discarded here.
    return out.reshape(num_tiles * tile_b)[:B].reshape(B, 1)


if __name__ == "__main__":
    # Small shapes consistent with the module: batch=8, feature=32, hidden=32.
    batch, feature_size, hidden_size = 8, 32, 32

    key = jax.random.PRNGKey(0)
    kx, kw1, kb1, kw2, kb2, kx2 = jax.random.split(key, 6)

    x = jax.random.normal(kx, (batch, feature_size), dtype=jnp.float32)
    # Parameters follow nn.Linear semantics (weights stored pre-transposed).
    w1 = jax.random.normal(kw1, (feature_size, hidden_size), dtype=jnp.float32) * 0.1
    b1 = jax.random.normal(kb1, (hidden_size,), dtype=jnp.float32) * 0.1
    w2 = jax.random.normal(kw2, (hidden_size,), dtype=jnp.float32) * 0.1
    b2 = jax.random.normal(kb2, (), dtype=jnp.float32) * 0.1

    def ref_f32(xv):
        return jnp.maximum(xv @ w1 + b1[None, :], 0.0) @ w2[:, None] + b2

    # 1) Pallas kernel at the module's small shape (force the kernel path).
    out = jax.block_until_ready(
        leaf_classifier(x, w1, b1, w2, b2, small_batch_threshold=0))
    assert out.shape == (batch, 1)

    # Reference with the kernel's bf16-operand / f32-accumulate contract.
    h_bf = jnp.dot(x.astype(jnp.bfloat16), w1.astype(jnp.bfloat16),
                   preferred_element_type=jnp.float32)
    h_bf = jnp.maximum(h_bf + b1[None, :], 0.0)
    ref_bf16 = jnp.sum(h_bf * w2[None, :], axis=-1, keepdims=True) + b2
    assert jnp.allclose(out, ref_bf16, atol=2e-3, rtol=2e-3), \
        float(jnp.abs(out - ref_bf16).max())
    # Looser check against the pure-f32 PyTorch semantics.
    assert jnp.allclose(out, ref_f32(x), atol=5e-2, rtol=5e-2), \
        float(jnp.abs(out - ref_f32(x)).max())

    # 2) Multi-tile + ragged-batch Pallas path (B not a multiple of tile_b),
    #    f32 operands for tighter parity with the module.
    B2 = 300
    x2 = jax.random.normal(kx2, (B2, feature_size), dtype=jnp.float32)
    out2 = jax.block_until_ready(
        leaf_classifier(x2, w1, b1, w2, b2, use_bf16=False,
                        small_batch_threshold=0))
    assert out2.shape == (B2, 1)
    assert jnp.allclose(out2, ref_f32(x2), atol=2e-2, rtol=2e-2), \
        float(jnp.abs(out2 - ref_f32(x2)).max())

    # 3) Small-batch XLA fast path (default dispatch).
    out_fast = jax.block_until_ready(leaf_classifier(x, w1, b1, w2, b2))
    assert out_fast.shape == (batch, 1)
    assert jnp.allclose(out_fast, ref_f32(x), atol=1e-4, rtol=1e-4), \
        float(jnp.abs(out_fast - ref_f32(x)).max())

    print("KERNEL_OK")
</pallas_src>

<mosaic_0001>
module attributes {stable_mosaic.version = 11 : i64} {
  func.func @_leaf_classifier_kernel(%arg0: i32, %arg1: memref<8x32xf32, #tpu.memory_space<vmem>>, %arg2: memref<32x32xbf16, #tpu.memory_space<vmem>>, %arg3: memref<32x1xf32, #tpu.memory_space<vmem>>, %arg4: memref<32x1xf32, #tpu.memory_space<vmem>>, %arg5: memref<1x1xf32, #tpu.memory_space<smem>>, %arg6: memref<1x1x8xf32, #tpu.memory_space<vmem>>) attributes {dimension_semantics = [#tpu.dimension_semantics<parallel>], iteration_bounds = array<i64: 1>, scalar_prefetch = 0 : i64, scratch_operands = 0 : i64, tpu.core_type = #tpu.core_type<tc>, window_params = [{transform_indices = @transform_0, window_bounds = array<i64: 8, 32>}, {pipeline_mode = #tpu.pipeline_mode<synchronous>, transform_indices = @transform_1, window_bounds = array<i64: 32, 32>}, {pipeline_mode = #tpu.pipeline_mode<synchronous>, transform_indices = @transform_2, window_bounds = array<i64: 32, 1>}, {pipeline_mode = #tpu.pipeline_mode<synchronous>, transform_indices = @transform_3, window_bounds = array<i64: 32, 1>}, {transform_indices = @transform_4, window_bounds = array<i64: 1, 1>}, {transform_indices = @transform_5, window_bounds = array<i64: 1, 1, 8>}]} {
    %c0 = arith.constant 0 : index
    %c0_0 = arith.constant 0 : index
    %0 = vector.load %arg2[%c0, %c0_0] : memref<32x32xbf16, #tpu.memory_space<vmem>>, vector<32x32xbf16>
    %c0_1 = arith.constant 0 : index
    %c0_2 = arith.constant 0 : index
    %1 = vector.load %arg1[%c0_1, %c0_2] : memref<8x32xf32, #tpu.memory_space<vmem>>, vector<8x32xf32>
    %2 = arith.truncf %1 : vector<8x32xf32> to vector<8x32xbf16>
    %cst = arith.constant dense<0.000000e+00> : vector<32x8xf32>
    %3 = tpu.matmul %0, %2, %cst {dimension_numbers = #tpu.dot_dimension_numbers<[1], [1], [0], [0], [0, 0, 1, 0], [], []>} : vector<32x32xbf16>, vector<8x32xbf16>, vector<32x8xf32> -> vector<32x8xf32>
    %c0_3 = arith.constant 0 : index
    %c0_4 = arith.constant 0 : index
    %4 = vector.load %arg3[%c0_3, %c0_4] : memref<32x1xf32, #tpu.memory_space<vmem>>, vector<32x1xf32>
    %5 = vector.broadcast %4 : vector<32x1xf32> to vector<32x8xf32>
    %6 = arith.addf %3, %5 : vector<32x8xf32>
    %cst_5 = arith.constant 0.000000e+00 : f32
    %7 = vector.broadcast %cst_5 : f32 to vector<32x8xf32>
    %8 = arith.maximumf %6, %7 : vector<32x8xf32>
    %c0_6 = arith.constant 0 : index
    %c0_7 = arith.constant 0 : index
    %9 = vector.load %arg4[%c0_6, %c0_7] : memref<32x1xf32, #tpu.memory_space<vmem>>, vector<32x1xf32>
    %10 = vector.broadcast %9 : vector<32x1xf32> to vector<32x8xf32>
    %11 = arith.mulf %8, %10 : vector<32x8xf32>
    %cst_8 = arith.constant dense<0.000000e+00> : vector<8xf32>
    %12 = vector.multi_reduction <add>, %11, %cst_8 [0] : vector<32x8xf32> to vector<8xf32>
    %c0_9 = arith.constant 0 : index
    %c0_10 = arith.constant 0 : index
    %13 = memref.load %arg5[%c0_9, %c0_10] : memref<1x1xf32, #tpu.memory_space<smem>>
    %14 = vector.broadcast %13 : f32 to vector<8xf32>
    %15 = arith.addf %12, %14 : vector<8xf32>
    %16 = vector.shape_cast %15 : vector<8xf32> to vector<1x1x8xf32>
    %c0_11 = arith.constant 0 : index
    %c0_12 = arith.constant 0 : index
    %c0_13 = arith.constant 0 : index
    %17 = vector.load %arg6[%c0_11, %c0_12, %c0_13] : memref<1x1x8xf32, #tpu.memory_space<vmem>>, vector<1x1x8xf32>
    tpu.vector_store %arg6[%c0_11, %c0_12, %c0_13], %16 {strides = array<i32>} : memref<1x1x8xf32, #tpu.memory_space<vmem>>, vector<1x1x8xf32>,
    return
  }
  func.func @transform_0(%arg0: i32) -> (i32, i32) {
    %c0_i32 = arith.constant 0 : i32
    %c0_i32_0 = arith.constant 0 : i32
    return %arg0, %c0_i32 : i32, i32
  }
  func.func @transform_1(%arg0: i32) -> (i32, i32) {
    %c0_i32 = arith.constant 0 : i32
    %c0_i32_0 = arith.constant 0 : i32
    %c0_i32_1 = arith.constant 0 : i32
    return %c0_i32, %c0_i32_0 : i32, i32
  }
  func.func @transform_2(%arg0: i32) -> (i32, i32) {
    %c0_i32 = arith.constant 0 : i32
    %c0_i32_0 = arith.constant 0 : i32
    %c0_i32_1 = arith.constant 0 : i32
    return %c0_i32, %c0_i32_0 : i32, i32
  }
  func.func @transform_3(%arg0: i32) -> (i32, i32) {
    %c0_i32 = arith.constant 0 : i32
    %c0_i32_0 = arith.constant 0 : i32
    %c0_i32_1 = arith.constant 0 : i32
    return %c0_i32, %c0_i32_0 : i32, i32
  }
  func.func @transform_4(%arg0: i32) -> (i32, i32) {
    %c0_i32 = arith.constant 0 : i32
    %c0_i32_0 = arith.constant 0 : i32
    %c0_i32_1 = arith.constant 0 : i32
    return %c0_i32, %c0_i32_0 : i32, i32
  }
  func.func @transform_5(%arg0: i32) -> (i32, i32, i32) {
    %c0_i32 = arith.constant 0 : i32
    %c0_i32_0 = arith.constant 0 : i32
    %c0_i32_1 = arith.constant 0 : i32
    return %arg0, %c0_i32, %c0_i32_0 : i32, i32, i32
  }
}

</mosaic_0001>

<bundles_post_ra>
// kernel: tpu_custom_call.1
= control target key start
LH: loop header
LB: loop body
LE: loop exit
PB: predicated region body
PF: predicated region fallthrough
CT: control target
= control target key end

     0   :  { %vm63_vm0 = vcmask 261120   ;;  %v231_v3 = vmov 0   ;;  %s315_s0 = inlined_call_operand.vmem [shape: f32[8,32], index: 0, kind: input, shape index: {}]   ;;  %s316_s1 = inlined_call_operand.vmem [shape: bf16[32,32], index: 1, kind: input, shape index: {}]   ;;  %s317_s2 = inlined_call_operand.vmem [shape: f32[32,1], index: 2, kind: input, shape index: {}]   ;;  %s318_s3 = inlined_call_operand.vmem [shape: f32[32,1], index: 3, kind: input, shape index: {}]   ;;  %s319_s4 = inlined_call_operand.<no memory space> [shape: f32[1,1], index: 4, kind: input, shape index: {}]   ;;  %s320_s5 = inlined_call_operand.hbm [shape: f32[1,1,8], index: 5, kind: output, shape index: {}]  }
   0x1   :  { %v27_v0 = vld [vmem:[%s315_s0] sm:$0xff]  ;;  %203 = vset.pattern.permute.xlu0 %v231_v3  ;;  %204 = vset.pattern.permute.xlu1 %v231_v3  ;;  %v31_v5 = vld [vmem:[%s317_s2 + $0x10] sm:$0xff]  ;;  %v30_v7 = vld [vmem:[%s317_s2 + $0x8] sm:$0xff] }
   0x2   :  { %v28_v1 = vpack.c.bf16 %v27_v0, %v27_v0  ;;  %v205_v2 = vld [vmem:[%s316_s1] sm:$0xff]   ;;  %45 = vperm.xlu1 %204, %v31_v5  }
   0x3   :  { %v29_v4 = vld [vmem:[%s317_s2] sm:$0xff]  ;;  %196 = vmatprep.mubr.msk.bf16.mxu0 %vm63_vm0, %v205_v2 }
   0x4   :  { %200 = vmatprep.subr.msk.bf16.mxu0 %vm63_vm0, %v28_v1  ;;  %v71_v6 = vsel %vm63_vm0, %v28_v1, 0  ;;  %35 = vperm.xlu0 %203, %v29_v4  }
   0x5   :  { %195 = vmatpush3.bf16.xpose.msra.mxu0 %v71_v6 }
   0x6   :  { %11 = vsyncpa [#allocation4], 0  ;;  %v32_v8 = vld [vmem:[%s317_s2 + $0x18] sm:$0xff]  ;;  %v206_v9 = vld [vmem:[%s316_s1 + $0x8] sm:$0xff]   ;;  %vm154_vm1 = vcmask 64512   ;;  %v169_v50 = vstv %s319_s4  ;;  %s232_s13 = smov [#allocation3]  }
   0x7   :  { %50 = vperm.xlu1 %204, %v32_v8   ;;  %v126_v10 = vld [vmem:[%s318_s3] sm:$0xff]  ;;  %v127_v11 = vld [vmem:[%s318_s3 + $0x8] sm:$0xff]  ;;  %v128_v12 = vld [vmem:[%s318_s3 + $0x10] sm:$0xff]  ;;  %s179_s14 = sshll.u32 %s232_s13, 4  ;;  %vm171_vm2 = vcmask 57344   ;;  %s180_s14 = int_to_ptr.vmem [resolvable:$true] %s179_s14 }
   0x8   :  { %40 = vperm.xlu0 %203, %v30_v7   ;;  %v129_v13 = vld [vmem:[%s318_s3 + $0x18] sm:$0xff]  ;;  %s207_s15 = scalar_lea.vmem %s180_s14, 16  ;;  %s211_s16 = scalar_lea.vmem %s180_s14, 32 }
   0x9   :  { %p208_p0 = scmp.ne.s32.totalorder %s180_s14, %s207_s15  ;;  %p212_p1 = scmp.lt.s32.totalorder %s180_s14, %s180_s14 }
   0xa   :  { %p213_p2 = scmp.lt.s32.totalorder %s211_s16, %s207_s15 }
   0xb   :  { %137 = vperm.xlu1 %204, %v127_v11  }
   0xc   :  { %197 = vmatmul.mubr.msk.bf16.vlgmr.msra.gmra.mrb[0].mxu0 %vm63_vm0, %v206_v9  ;;  %132 = vperm.xlu0 %203, %v126_v10   ;;  %p214_p3 = por %p213_p2, %p212_p1 }
   0xe   :  { %p215_p4 = pnand %p214_p3, %p208_p0 }
   0xf   :  { %147 = vperm.xlu1 %204, %v129_v13  }
  0x10   :  { %142 = vperm.xlu0 %203, %v128_v12  }
  0x81   :  { %v46_v15 = vpop.permute.xlu1 %45 }
  0x83   :  { %v36_v14 = vpop.permute.xlu0 %35 }
  0x86   :  { %v51_v17 = vpop.permute.xlu1 %50 }
  0x87   :  { %v41_v16 = vpop.permute.xlu0 %40 }
  0x8a   :  { %v138_v24 = vpop.permute.xlu1 %137 }
  0x8b   :  { %v133_v19 = vpop.permute.xlu0 %132 }
  0x8e   :  { %v148_v36 = vpop.permute.xlu1 %147 }
  0x8f   :  { %v143_v33 = vpop.permute.xlu0 %142 }
  0xdf   :  { %v198_v18 = vpop.f32.mrb[0].mxu0 }
  0xe0   :  { %v116_v20 = vadd.f32 %v198_v18, %v46_v15  ;;  %v107_v21 = vpop.f32.mrb[1].mxu0 }
  0xe1   :  { %v108_v22 = vadd.f32 %v107_v21, %v36_v14  ;;  %v199_v23 = vpop.f32.mrb[2].mxu0 }
  0xe2   :  { %v119_v25 = vadd.f32 %v199_v23, %v51_v17  ;;  %v110_v26 = vpop.f32.mrb[3].mxu0  ;;  %v124_v27 = vmax.f32 %v116_v20, 0.0 }
  0xe3   :  { %v122_v28 = vmax.f32 %v108_v22, 0.0  ;;  %v111_v29 = vadd.f32 %v110_v26, %v41_v16 }
  0xe4   :  { %v125_v31 = vmax.f32 %v119_v25, 0.0  ;;  %v152_v34 = vmul.f32 %v143_v33, %v124_v27 }
  0xe5   :  { %v150_v30 = vmul.f32 %v133_v19, %v122_v28  ;;  %v123_v32 = vmax.f32 %v111_v29, 0.0 }
  0xe6   :  { %v153_v38 = vmul.f32 %v148_v36, %v125_v31  ;;  %v158_v41 = vsel %vm154_vm1, %v152_v34, 0.0 }
  0xe7   :  { %v151_v35 = vmul.f32 %v138_v24, %v123_v32  ;;  %v155_v37 = vsel %vm154_vm1, %v150_v30, 0.0 }
  0xe8   :  { %v160_v43 = vsel %vm154_vm1, %v153_v38, 0.0 }
  0xe9   :  { %v156_v39 = vsel %vm154_vm1, %v151_v35, 0.0 }
  0xea   :  { %v157_v40 = vadd.f32 %v156_v39, %v155_v37 }
  0xec   :  { %v159_v42 = vadd.f32 %v158_v41, %v157_v40 }
  0xee   :  { %v161_v44 = vadd.f32 %v160_v43, %v159_v42 }
  0xf0   :  { %v162_v45 = vrot.slane %v161_v44, 4 }
  0xf2   :  { %v163_v46 = vadd.f32 %v162_v45, %v161_v44 }
  0xf4   :  { %v164_v47 = vrot.slane %v163_v46, 2 }
  0xf6   :  { %v165_v48 = vadd.f32 %v164_v47, %v163_v46 }
  0xf8   :  { %v166_v49 = vrot.slane %v165_v48, 1 }
  0xfa   :  { %v167_v51 = vadd.f32 %v166_v49, %v165_v48 }
  0xfc   :  { %v170_v52 = vadd.f32 %v169_v50, %v167_v51 }
  0xfe   :  { %172 = vst.msk [vmem:[#allocation3] sm:$0x1] %vm171_vm2, %v170_v52 }
  0xff   :  { %218 = shalt.err (!%p215_p4)
}
 0x100   :  { %s219_s19 = scalar_lea.hbm %s320_s5, 16 }
 0x101   :  { %p220_p5 = scmp.ne.s32.totalorder %s320_s5, %s219_s19  ;;  %p223_p6 = scmp.lt.u32.totalorder %s219_s19, %s320_s5 }
 0x103   :  { %p225_p7 = pnand %p223_p6, %p220_p5 }
 0x105   :  { %228 = shalt.err (!%p225_p7)
}
 0x106   :  { %182 = dma.vmem_to_hbm [thread:$0]  %s180_s14, 16, %s320_s5, [#allocation4]  }
 0x107   :  { %229 = dma.done.wait [#allocation4], 16  }
 0x108   :  { %230 = vsyncadd [#allocation4], 4294967280 }
 0x109   :  { %186 = vsyncpa [#allocation4], 1 }

</bundles_post_ra>
